<compile_context>
chip_gen: v6e
topology: v6e:2x2x1
jax: 0.10.0
libtpu: 0.0.40
codegen_flags: <defaults>
</compile_context>

<pallas_src>
import functools

import jax
import jax.numpy as jnp
from jax.experimental import pallas as pl
from jax.experimental.pallas import tpu as pltpu


def _round_up(v, m):
    return (v + m - 1) // m * m


# ---------------------------------------------------------------------------
# Fused multi-layer GCN kernel (one grid step per layer)
# ---------------------------------------------------------------------------
def _gnn_fused_kernel(a_ref, x_ref, w_ref, b_ref, out_ref, pen_ref, h_ref,
                      *, num_layers, hidden_dim, eps=1e-5):
    l = pl.program_id(0)

    # Seed the resident hidden-state scratch with the (padded) input features.
    @pl.when(l == 0)
    def _():
        h_ref[...] = x_ref[...]

    w = w_ref[0]          # (F_pad, F_pad)
    b = b_ref[0]          # (1, F_pad)

    # GCNConv: linear transform, then symmetric-normalized propagation, + bias.
    xw = jnp.dot(h_ref[...], w, preferred_element_type=jnp.float32)
    h = jnp.dot(a_ref[...], xw, preferred_element_type=jnp.float32) + b

    # Hidden layers: ReLU + InstanceNorm (over the TRUE feature width), keep
    # the result resident in VMEM for the next layer.
    @pl.when(l < num_layers - 1)
    def _():
        hr = jnp.maximum(h, 0.0)
        lane = jax.lax.broadcasted_iota(jnp.int32, hr.shape, 1)
        valid = lane < hidden_dim                       # mask out padded lanes
        hm = jnp.where(valid, hr, 0.0)
        mean = jnp.sum(hm, axis=1, keepdims=True) * (1.0 / hidden_dim)
        diff = jnp.where(valid, hr - mean, 0.0)
        # torch.std default = unbiased (N-1); eps is added to std (not var),
        # matching the provided InstanceNorm reference exactly.
        # NOTE: hidden_dim == 1 would be NaN in torch too; guarded div here.
        var = jnp.sum(diff * diff, axis=1, keepdims=True) * (
            1.0 / max(hidden_dim - 1, 1))
        inv_std = pl.reciprocal(jnp.sqrt(var) + eps, approx=True)  # EUP slot
        h_ref[...] = diff * inv_std                     # padded lanes stay 0

    # Penultimate activations = hidden state after the (L-1)-th layer's norm.
    @pl.when(l == num_layers - 2)
    def _():
        pen_ref[...] = h_ref[...]

    # Output layer: no ReLU / norm.
    @pl.when(l == num_layers - 1)
    def _():
        out_ref[...] = h


def gnn_f_prime_forward(x, a_hat, params):
    """Fused forward pass. Returns (out, penultimate) like the PyTorch module.

    x: [N, input_dim], a_hat: [N, N], params: list of (W:[Fin,Fout], b:[Fout]).
    """
    n, input_dim = x.shape
    num_layers = len(params)
    assert num_layers >= 2, "GNN_F_Prime has at least conv1 + conv_out"
    hidden_dim = params[0][0].shape[1]
    output_dim = params[-1][0].shape[1]

    f_pad = _round_up(max(input_dim, hidden_dim, output_dim), 128)  # lane-dense
    n_pad = _round_up(n, 8)                                         # sublane

    a_p = jnp.zeros((n_pad, n_pad), jnp.float32).at[:n, :n].set(a_hat)
    x_p = jnp.zeros((n_pad, f_pad), jnp.float32).at[:n, :input_dim].set(x)
    w_stack = jnp.zeros((num_layers, f_pad, f_pad), jnp.float32)
    b_stack = jnp.zeros((num_layers, 1, f_pad), jnp.float32)
    for i, (w, b) in enumerate(params):
        w_stack = w_stack.at[i, :w.shape[0], :w.shape[1]].set(w)
        b_stack = b_stack.at[i, 0, :b.shape[0]].set(b)

    kernel = functools.partial(
        _gnn_fused_kernel, num_layers=num_layers, hidden_dim=hidden_dim)

    # Advisory cost estimate for XLA scheduling around the kernel.
    flops = num_layers * (2 * n_pad * f_pad * f_pad + 2 * n_pad * n_pad * f_pad)
    transcendentals = max(num_layers - 1, 0) * n_pad * 2
    bytes_accessed = 4 * (n_pad * n_pad + n_pad * f_pad
                          + num_layers * (f_pad * f_pad + f_pad)
                          + 2 * n_pad * f_pad)

    # Resident VMEM: Â + X + double-buffered (W, b) + 2 outputs + H scratch.
    resident_bytes = 4 * (n_pad * n_pad + n_pad * f_pad
                          + 2 * (f_pad * f_pad + f_pad)
                          + 3 * n_pad * f_pad)
    # Stay well under v7x's 64 MiB physical VMEM per TensorCore.
    vmem_limit = int(min(max(2 * resident_bytes, 8 * 1024 * 1024),
                         48 * 1024 * 1024))

    out_p, pen_p = pl.pallas_call(
        kernel,
        out_shape=(jax.ShapeDtypeStruct((n_pad, f_pad), jnp.float32),
                   jax.ShapeDtypeStruct((n_pad, f_pad), jnp.float32)),
        grid=(num_layers,),
        in_specs=[
            pl.BlockSpec((n_pad, n_pad), lambda l: (0, 0)),      # Â: loaded once
            pl.BlockSpec((n_pad, f_pad), lambda l: (0, 0)),      # X: loaded once
            pl.BlockSpec((1, f_pad, f_pad), lambda l: (l, 0, 0)),  # W per layer
            pl.BlockSpec((1, 1, f_pad), lambda l: (l, 0, 0)),      # b per layer
        ],
        out_specs=(
            pl.BlockSpec((n_pad, f_pad), lambda l: (0, 0)),      # out
            pl.BlockSpec((n_pad, f_pad), lambda l: (0, 0)),      # penultimate
        ),
        scratch_shapes=[pltpu.VMEM((n_pad, f_pad), jnp.float32)],  # resident H
        compiler_params=pltpu.CompilerParams(
            dimension_semantics=("arbitrary",),
            vmem_limit_bytes=vmem_limit,
        ),
        cost_estimate=pl.CostEstimate(
            flops=flops,
            transcendentals=transcendentals,
            bytes_accessed=bytes_accessed,
        ),
    )(a_p, x_p, w_stack, b_stack)

    return out_p[:n, :output_dim], pen_p[:n, :hidden_dim]


# ---------------------------------------------------------------------------
# Glue: normalized adjacency, deterministic params, pure-JAX reference
# ---------------------------------------------------------------------------
def build_normalized_adjacency(edge_index, num_nodes):
    """Â = D^{-1/2} (A + I) D^{-1/2}, dense, from a [2, E] edge_index.

    Duplicate edges are summed (scatter-add), matching PyG's gcn_norm.
    """
    src, dst = edge_index
    a = jnp.zeros((num_nodes, num_nodes), jnp.float32)
    a = a.at[dst, src].add(1.0)                       # message flows src -> dst
    a = a + jnp.eye(num_nodes, dtype=jnp.float32)     # add self loops
    deg = jnp.sum(a, axis=1)
    dinv = jnp.where(deg > 0, 1.0 / jnp.sqrt(deg), 0.0)
    return dinv[:, None] * a * dinv[None, :]


def init_params(key, num_layers, input_dim, hidden_dim, output_dim):
    """Deterministic (PRNGKey-seeded) GCN weights: list of (W, b)."""
    dims = [input_dim] + [hidden_dim] * (num_layers - 1) + [output_dim]
    params = []
    for i in range(num_layers):
        key, kw = jax.random.split(key)
        fan_in, fan_out = dims[i], dims[i + 1]
        scale = 1.0 / jnp.sqrt(jnp.float32(fan_in))
        w = jax.random.uniform(kw, (fan_in, fan_out), jnp.float32, -scale, scale)
        b = jnp.zeros((fan_out,), jnp.float32)
        params.append((w, b))
    return params


def reference_forward(x, a_hat, params):
    """Pure-JAX reference mirroring the PyTorch module (for validation)."""
    h = x
    pen = None
    num_layers = len(params)
    for i, (w, b) in enumerate(params):
        h = a_hat @ (h @ w) + b
        if i < num_layers - 1:
            h = jnp.maximum(h, 0.0)
            mean = jnp.mean(h, axis=1, keepdims=True)
            var = jnp.sum((h - mean) ** 2, axis=1, keepdims=True) / (h.shape[1] - 1)
            h = (h - mean) / (jnp.sqrt(var) + 1e-5)
            if i == num_layers - 2:
                pen = h
    return h, pen


if __name__ == "__main__":
    # Small deterministic problem: 16 nodes, input_dim=8, hidden=32, output=8,
    # num_layers=3 (conv1 + 1 hidden conv + conv_out).
    num_nodes = 16
    input_dim = 8
    hidden_dim = 32
    output_dim = 8
    num_layers = 3

    key = jax.random.PRNGKey(0)
    k_x, k_e, k_p = jax.random.split(key, 3)

    x = jax.random.normal(k_x, (num_nodes, input_dim), jnp.float32)

    # Deterministic ring graph + a few random chords, as a [2, E] edge_index.
    ring_src = jnp.arange(num_nodes)
    ring_dst = (ring_src + 1) % num_nodes
    extra_src = jax.random.randint(k_e, (8,), 0, num_nodes)
    extra_dst = (extra_src + 5) % num_nodes
    src = jnp.concatenate([ring_src, ring_dst, extra_src])
    dst = jnp.concatenate([ring_dst, ring_src, extra_dst])
    edge_index = jnp.stack([src, dst], axis=0)

    a_hat = build_normalized_adjacency(edge_index, num_nodes)
    params = init_params(k_p, num_layers, input_dim, hidden_dim, output_dim)

    out, penultimate = gnn_f_prime_forward(x, a_hat, params)
    jax.block_until_ready(out)
    jax.block_until_ready(penultimate)

    assert out.shape == (num_nodes, output_dim)
    assert penultimate.shape == (num_nodes, hidden_dim)
    assert bool(jnp.all(jnp.isfinite(out)))

    # Validate against the pure-JAX reference (loose tol: approx reciprocal on
    # the EUP + f32 accumulation-order differences).
    ref_out, ref_pen = reference_forward(x, a_hat, params)
    assert jnp.allclose(out, ref_out, atol=2e-2, rtol=2e-2), \
        float(jnp.max(jnp.abs(out - ref_out)))
    assert jnp.allclose(penultimate, ref_pen, atol=2e-2, rtol=2e-2), \
        float(jnp.max(jnp.abs(penultimate - ref_pen)))

    print("KERNEL_OK")
</pallas_src>

<mosaic_0001>
module attributes {stable_mosaic.version = 11 : i64} {
  func.func @_gnn_fused_kernel(%arg0: i32, %arg1: memref<16x16xf32, #tpu.memory_space<vmem>>, %arg2: memref<16x128xf32, #tpu.memory_space<vmem>>, %arg3: memref<1x128x128xf32, #tpu.memory_space<vmem>>, %arg4: memref<1x1x128xf32, #tpu.memory_space<vmem>>, %arg5: memref<16x128xf32, #tpu.memory_space<vmem>>, %arg6: memref<16x128xf32, #tpu.memory_space<vmem>>, %arg7: memref<16x128xf32, #tpu.memory_space<vmem>>) attributes {dimension_semantics = [#tpu.dimension_semantics<arbitrary>], iteration_bounds = array<i64: 3>, scalar_prefetch = 0 : i64, scratch_operands = 1 : i64, tpu.core_type = #tpu.core_type<tc>, window_params = [{pipeline_mode = #tpu.pipeline_mode<synchronous>, transform_indices = @transform_0, window_bounds = array<i64: 16, 16>}, {pipeline_mode = #tpu.pipeline_mode<synchronous>, transform_indices = @transform_1, window_bounds = array<i64: 16, 128>}, {transform_indices = @transform_2, window_bounds = array<i64: 1, 128, 128>}, {transform_indices = @transform_3, window_bounds = array<i64: 1, 1, 128>}, {pipeline_mode = #tpu.pipeline_mode<synchronous>, transform_indices = @transform_4, window_bounds = array<i64: 16, 128>}, {pipeline_mode = #tpu.pipeline_mode<synchronous>, transform_indices = @transform_5, window_bounds = array<i64: 16, 128>}]} {
    %c0_i32 = arith.constant 0 : i32
    %0 = arith.cmpi eq, %arg0, %c0_i32 : i32
    %1 = arith.extui %0 : i1 to i32
    %c0_i32_0 = arith.constant 0 : i32
    %2 = arith.cmpi ne, %1, %c0_i32_0 : i32
    scf.if %2 {
      %c0_15 = arith.constant 0 : index
      %c0_16 = arith.constant 0 : index
      %22 = vector.load %arg2[%c0_15, %c0_16] : memref<16x128xf32, #tpu.memory_space<vmem>>, vector<16x128xf32>
      %c0_17 = arith.constant 0 : index
      %c0_18 = arith.constant 0 : index
      %23 = vector.load %arg7[%c0_17, %c0_18] : memref<16x128xf32, #tpu.memory_space<vmem>>, vector<16x128xf32>
      tpu.vector_store %arg7[%c0_17, %c0_18], %22 {strides = array<i32>} : memref<16x128xf32, #tpu.memory_space<vmem>>, vector<16x128xf32>,
    } else {
    }
    %c0 = arith.constant 0 : index
    %c0_1 = arith.constant 0 : index
    %c0_2 = arith.constant 0 : index
    %3 = vector.load %arg3[%c0, %c0_1, %c0_2] : memref<1x128x128xf32, #tpu.memory_space<vmem>>, vector<1x128x128xf32>
    %4 = vector.shape_cast %3 : vector<1x128x128xf32> to vector<128x128xf32>
    %c0_3 = arith.constant 0 : index
    %c0_4 = arith.constant 0 : index
    %c0_5 = arith.constant 0 : index
    %5 = vector.load %arg4[%c0_3, %c0_4, %c0_5] : memref<1x1x128xf32, #tpu.memory_space<vmem>>, vector<1x1x128xf32>
    %6 = vector.shape_cast %5 : vector<1x1x128xf32> to vector<1x128xf32>
    %c0_6 = arith.constant 0 : index
    %c0_7 = arith.constant 0 : index
    %7 = vector.load %arg7[%c0_6, %c0_7] : memref<16x128xf32, #tpu.memory_space<vmem>>, vector<16x128xf32>
    %cst = arith.constant dense<0.000000e+00> : vector<16x128xf32>
    %8 = tpu.matmul %7, %4, %cst {dimension_numbers = #tpu.dot_dimension_numbers<[1], [0], [0], [1], [0, 0, 1, 1], [], []>} : vector<16x128xf32>, vector<128x128xf32>, vector<16x128xf32> -> vector<16x128xf32>
    %c0_8 = arith.constant 0 : index
    %c0_9 = arith.constant 0 : index
    %9 = vector.load %arg1[%c0_8, %c0_9] : memref<16x16xf32, #tpu.memory_space<vmem>>, vector<16x16xf32>
    %cst_10 = arith.constant dense<0.000000e+00> : vector<16x128xf32>
    %10 = tpu.matmul %9, %8, %cst_10 {dimension_numbers = #tpu.dot_dimension_numbers<[1], [0], [0], [1], [0, 0, 1, 1], [], []>} : vector<16x16xf32>, vector<16x128xf32>, vector<16x128xf32> -> vector<16x128xf32>
    %11 = vector.broadcast %6 : vector<1x128xf32> to vector<16x128xf32>
    %12 = arith.addf %10, %11 : vector<16x128xf32>
    %c2_i32 = arith.constant 2 : i32
    %13 = arith.cmpi slt, %arg0, %c2_i32 : i32
    %14 = arith.extui %13 : i1 to i32
    %c0_i32_11 = arith.constant 0 : i32
    %15 = arith.cmpi ne, %14, %c0_i32_11 : i32
    scf.if %15 {
      %cst_15 = arith.constant 0.000000e+00 : f32
      %22 = vector.broadcast %cst_15 : f32 to vector<16x128xf32>
      %23 = arith.maximumf %12, %22 : vector<16x128xf32>
      %24 = tpu.iota {dimensions = array<i32: 1>} : vector<16x128xi32>
      %c32_i32 = arith.constant 32 : i32
      %25 = vector.broadcast %c32_i32 : i32 to vector<16x128xi32>
      %26 = arith.cmpi slt, %24, %25 : vector<16x128xi32>
      %cst_16 = arith.constant 0.000000e+00 : f32
      %27 = vector.broadcast %cst_16 : f32 to vector<16x128xf32>
      %28 = arith.select %26, %23, %27 : vector<16x128xi1>, vector<16x128xf32>
      %cst_17 = arith.constant dense<0.000000e+00> : vector<16xf32>
      %29 = vector.multi_reduction <add>, %28, %cst_17 [1] : vector<16x128xf32> to vector<16xf32>
      %30 = vector.shape_cast %29 : vector<16xf32> to vector<16x1xf32>
      %cst_18 = arith.constant 3.125000e-02 : f32
      %31 = vector.broadcast %cst_18 : f32 to vector<16x1xf32>
      %32 = arith.mulf %30, %31 : vector<16x1xf32>
      %33 = vector.broadcast %32 : vector<16x1xf32> to vector<16x128xf32>
      %34 = arith.subf %23, %33 : vector<16x128xf32>
      %cst_19 = arith.constant 0.000000e+00 : f32
      %35 = vector.broadcast %cst_19 : f32 to vector<16x128xf32>
      %36 = arith.select %26, %34, %35 : vector<16x128xi1>, vector<16x128xf32>
      %37 = arith.mulf %36, %36 : vector<16x128xf32>
      %cst_20 = arith.constant dense<0.000000e+00> : vector<16xf32>
      %38 = vector.multi_reduction <add>, %37, %cst_20 [1] : vector<16x128xf32> to vector<16xf32>
      %39 = vector.shape_cast %38 : vector<16xf32> to vector<16x1xf32>
      %cst_21 = arith.constant 0.0322580636 : f32
      %40 = vector.broadcast %cst_21 : f32 to vector<16x1xf32>
      %41 = arith.mulf %39, %40 : vector<16x1xf32>
      %42 = math.sqrt %41 : vector<16x1xf32>
      %cst_22 = arith.constant 9.99999974E-6 : f32
      %43 = vector.broadcast %cst_22 : f32 to vector<16x1xf32>
      %44 = arith.addf %42, %43 : vector<16x1xf32>
      %45 = tpu.reciprocal %44 {approx = true} : vector<16x1xf32> -> vector<16x1xf32>
      %46 = vector.broadcast %45 : vector<16x1xf32> to vector<16x128xf32>
      %47 = arith.mulf %36, %46 : vector<16x128xf32>
      %c0_23 = arith.constant 0 : index
      %c0_24 = arith.constant 0 : index
      %48 = vector.load %arg7[%c0_23, %c0_24] : memref<16x128xf32, #tpu.memory_space<vmem>>, vector<16x128xf32>
      tpu.vector_store %arg7[%c0_23, %c0_24], %47 {strides = array<i32>} : memref<16x128xf32, #tpu.memory_space<vmem>>, vector<16x128xf32>,
    } else {
    }
    %c1_i32 = arith.constant 1 : i32
    %16 = arith.cmpi eq, %arg0, %c1_i32 : i32
    %17 = arith.extui %16 : i1 to i32
    %c0_i32_12 = arith.constant 0 : i32
    %18 = arith.cmpi ne, %17, %c0_i32_12 : i32
    scf.if %18 {
      %c0_15 = arith.constant 0 : index
      %c0_16 = arith.constant 0 : index
      %22 = vector.load %arg7[%c0_15, %c0_16] : memref<16x128xf32, #tpu.memory_space<vmem>>, vector<16x128xf32>
      %c0_17 = arith.constant 0 : index
      %c0_18 = arith.constant 0 : index
      %23 = vector.load %arg6[%c0_17, %c0_18] : memref<16x128xf32, #tpu.memory_space<vmem>>, vector<16x128xf32>
      tpu.vector_store %arg6[%c0_17, %c0_18], %22 {strides = array<i32>} : memref<16x128xf32, #tpu.memory_space<vmem>>, vector<16x128xf32>,
    } else {
    }
    %c2_i32_13 = arith.constant 2 : i32
    %19 = arith.cmpi eq, %arg0, %c2_i32_13 : i32
    %20 = arith.extui %19 : i1 to i32
    %c0_i32_14 = arith.constant 0 : i32
    %21 = arith.cmpi ne, %20, %c0_i32_14 : i32
    scf.if %21 {
      %c0_15 = arith.constant 0 : index
      %c0_16 = arith.constant 0 : index
      %22 = vector.load %arg5[%c0_15, %c0_16] : memref<16x128xf32, #tpu.memory_space<vmem>>, vector<16x128xf32>
      tpu.vector_store %arg5[%c0_15, %c0_16], %12 {strides = array<i32>} : memref<16x128xf32, #tpu.memory_space<vmem>>, vector<16x128xf32>,
    } else {
    }
    return
  }
  func.func @transform_0(%arg0: i32) -> (i32, i32) {
    %c0_i32 = arith.constant 0 : i32
    %c0_i32_0 = arith.constant 0 : i32
    %c0_i32_1 = arith.constant 0 : i32
    return %c0_i32, %c0_i32_0 : i32, i32
  }
  func.func @transform_1(%arg0: i32) -> (i32, i32) {
    %c0_i32 = arith.constant 0 : i32
    %c0_i32_0 = arith.constant 0 : i32
    %c0_i32_1 = arith.constant 0 : i32
    return %c0_i32, %c0_i32_0 : i32, i32
  }
  func.func @transform_2(%arg0: i32) -> (i32, i32, i32) {
    %c0_i32 = arith.constant 0 : i32
    %c0_i32_0 = arith.constant 0 : i32
    %c0_i32_1 = arith.constant 0 : i32
    return %arg0, %c0_i32, %c0_i32_0 : i32, i32, i32
  }
  func.func @transform_3(%arg0: i32) -> (i32, i32, i32) {
    %c0_i32 = arith.constant 0 : i32
    %c0_i32_0 = arith.constant 0 : i32
    %c0_i32_1 = arith.constant 0 : i32
    return %arg0, %c0_i32, %c0_i32_0 : i32, i32, i32
  }
  func.func @transform_4(%arg0: i32) -> (i32, i32) {
    %c0_i32 = arith.constant 0 : i32
    %c0_i32_0 = arith.constant 0 : i32
    %c0_i32_1 = arith.constant 0 : i32
    return %c0_i32, %c0_i32_0 : i32, i32
  }
  func.func @transform_5(%arg0: i32) -> (i32, i32) {
    %c0_i32 = arith.constant 0 : i32
    %c0_i32_0 = arith.constant 0 : i32
    %c0_i32_1 = arith.constant 0 : i32
    return %c0_i32, %c0_i32_0 : i32, i32
  }
}

</mosaic_0001>

<bundles_post_ra>
// kernel: tpu_custom_call.1
= control target key start
LH: loop header
LB: loop body
LE: loop exit
PB: predicated region body
PF: predicated region fallthrough
CT: control target
= control target key end

     0   :  { %11 = vsyncpa [#allocation4], 0  ;;  %s1255_s0 = inlined_call_operand.hbm [shape: f32[16,16], index: 0, kind: input, shape index: {}]   ;;  %s1256_s1 = inlined_call_operand.hbm [shape: f32[16,128], index: 1, kind: input, shape index: {}]   ;;  %s1257_s2 = inlined_call_operand.hbm [shape: f32[3,128,128], index: 2, kind: input, shape index: {}]   ;;  %s1258_s3 = inlined_call_operand.vmem [shape: f32[3,1,128], index: 3, kind: input, shape index: {}]   ;;  %s1259_s4 = inlined_call_operand.hbm [shape: f32[16,128], index: 4, kind: output, shape index: {0}]   ;;  %s1260_s5 = inlined_call_operand.hbm [shape: f32[16,128], index: 5, kind: output, shape index: {1}]  }
   0x1   :  { %12 = vsyncpa [#allocation7], 0 }
   0x2   :  { %13 = vsyncpa [#allocation5], 0 }
   0x3   :  { %14 = vsyncpa [#allocation11], 0  ;;  %s1034_s18 = smov 0   ;;  %s1036_s19 = smov 0  }
   0x4   :  { %s1038_s20 = smov 0   ;;  %s1040_s21 = smov 0  }
   0x5 LB: > { %s1053_s22 = sadd.s32 4294967295, %s993_s21   ;;  %s1056_s23 = sadd.s32 1, %s993_s21   ;;  %s993_s21 = sphi %s1040_s21, %s1279_s21   ;;  %s989_s20 = sphi %s1038_s20, %s1278_s20   ;;  %s985_s19 = sphi %s1036_s19, %s1277_s19   ;;  %s981_s18 = sphi %s1034_s18, %s1276_s18  }
   0x6   : > { %s66_s24 = ssub.s32 %s993_s21, %s1056_s23  ;;  %s69_s25 = sadd.s32 1, %s989_s20 }
   0x7   : > { %p67_p0 = scmp.eq.s32.totalorder %s66_s24, 0  ;;  %p76_p1 = scmp.ne.s32.totalorder %s989_s20, %s985_s19 }
   0x8   : > { %p77_p2 = scmp.eq.s32.totalorder %s993_s21, 0  ;;  %p82_p3 = scmp.ne.s32.totalorder %s985_s19, %s981_s18 }
   0x9   : > { %s1066_s26 = scalar_select %p67_p0, %s989_s20, %s69_s25  }
   0xa   : > { %p1068_p4 = por %p77_p2, %p76_p1  ;;  %p1261_p5 = scmp.eq.s32.totalorder %s1053_s22, 0 }
   0xb   : > { %p640_p6 = scmp.ge.s32.totalorder %s993_s21, 1  ;;  %p161_p7 = scmp.lt.s32.totalorder %s993_s21, 4 }
   0xc   : > { %p1077_p8 = por %p1261_p5, %p82_p3  ;;  %s995_s30 = smov [#allocation3]  }
   0xd   : > { %p1082_p10 = pnand %p640_p6, %p161_p7  ;;  %s173_s6 = sshll.u32 %s995_s30, 4  ;;  %s174_s6 = int_to_ptr.vmem [resolvable:$true] %s173_s6 }
   0xe   : > { %s1265_s28 = scalar_select %p1077_p8, 1, 0 }
   0xf   : > { %s1266_s29 = scalar_select %p1082_p10, 1, 0 }
  0x10   : > { %p747_p11 = pneg %p1082_p10  ;;  %p760_p13 = scmp.lt.s32.totalorder %s993_s21, 3 }
  0x11   : > { %s826_s9 = scalar_lea.vmem %s174_s6, 256  ;;  %p834_p7 = scmp.lt.s32.totalorder %s174_s6, %s174_s6 }
  0x12   : > { %p1090_p12 = pnand %p747_p11, %p1261_p5  ;;  %p1097_p0 = pnand %p760_p13, %p1068_p4 }
  0x13   : > { %p827_p2 = scmp.ne.s32.totalorder %s174_s6, %s826_s9  ;;  %p835_p11 = scmp.lt.s32.totalorder %s826_s9, %s826_s9 }
  0x14   : > { %p817_p1 = pneg %p1090_p12 }
  0x15   : > { %p836_p9 = por %p835_p11, %p834_p7 }
  0x16   : > { %p829_p3 = pnand %p827_p2, %p817_p1 }
  0x18   : > { %p830_p6 = pneg %p829_p3 }
  0x1a   : > { %p837_p5 = pnand %p836_p9, %p830_p6 }
  0x1c   : > { %840 = shalt.err (!%p837_p5)
}
  0x1d   : > { %s996_s10 = smov 128   ;;  %s997_s11 = smov 8  }
  0x1e   : > { %750 = dma.hbm_to_vmem [thread:$0]  (!%p1090_p12), %s1255_s0, 256, %s174_s6, [#allocation4], %s996_s10, %s996_s10, %s997_s11  }
  0x1f   : > { %s998_s14 = smov [#allocation6]   ;;  %s200_s16 = sand.u32 1, %s993_s21  }
  0x20   : > { %s186_s15 = sshll.u32 %s998_s14, 4  ;;  %s187_s15 = int_to_ptr.vmem [resolvable:$true] %s186_s15 }
  0x21   : > { %s852_s17 = scalar_lea.vmem %s187_s15, 256  ;;  %p860_p13 = scmp.lt.s32.totalorder %s187_s15, %s187_s15 }
  0x22   : > { %p853_p4 = scmp.ne.s32.totalorder %s187_s15, %s852_s17  ;;  %p861_p2 = scmp.lt.s32.totalorder %s852_s17, %s852_s17 }
  0x24   : > { %p855_p5 = pnand %p853_p4, %p817_p1  ;;  %p862_p3 = por %p861_p2, %p860_p13 }
  0x26   : > { %p856_p9 = pneg %p855_p5 }
  0x28   : > { %p863_p6 = pnand %p862_p3, %p856_p9 }
  0x2a   : > { %866 = shalt.err (!%p863_p6)
}
  0x2b   : > { %753 = dma.hbm_to_vmem [thread:$0]  (!%p1090_p12), %s1256_s1, 256, %s187_s15, [#allocation7], %s996_s10, %s996_s10, %s997_s11  }
  0x2c   : > { %s202_s25 = sand.u32 1, %s989_s20   ;;  %s664_s27 = sshll.u32 %s993_s21, 11 }
  0x2d   : > { %s644_s30 = sshll.u32 %s202_s25, 7  ;;  %s1131_s12 = scalar_lea.hbm %s1257_s2, %s664_s27 }
  0x2e   : > { %s204_s7 = scalar_lea.vmem [#allocation8], %s644_s30  ;;  %s1135_s14 = scalar_lea.sflag [#allocation4], %s200_s16 }
  0x2f   : > { %s211_s13 = sshll.u32 %s204_s7, 4  ;;  %s867_s17 = scalar_lea.hbm %s1131_s12, 2048  ;;  %s1133_s13 = int_to_ptr.vmem [resolvable:$true] %s211_s13 }
  0x30   : > { %p868_p1 = scmp.ne.s32.totalorder %s1131_s12, %s867_s17  ;;  %p869_p12 = pneg %p1097_p0 }
  0x31   : > { %s872_s18 = scalar_lea.hbm %s1257_s2, 6144  ;;  %p873_p4 = scmp.lt.s32.totalorder %s1131_s12, %s1257_s2 }
  0x32   : > { %p870_p7 = pnand %p869_p12, %p868_p1  ;;  %p874_p5 = scmp.lt.s32.totalorder %s872_s18, %s867_s17 }
  0x34   : > { %p871_p11 = pneg %p870_p7  ;;  %p875_p9 = por %p874_p5, %p873_p4 }
  0x36   : > { %p876_p13 = pnand %p875_p9, %p871_p11 }
  0x38   : > { %879 = shalt.err (!%p876_p13)
}
  0x39   : > { %s880_s16 = scalar_lea.vmem %s1133_s13, 2048  ;;  %s999_s27 = smov [#allocation8]  }
  0x3a   : > { %p881_p2 = scmp.ne.s32.totalorder %s1133_s13, %s880_s16  ;;  %s885_s30 = sshll.u32 %s999_s27, 4  ;;  %s886_s30 = int_to_ptr.vmem [resolvable:$false] %s885_s30 }
  0x3b   : > { %s887_s6 = scalar_lea.vmem %s886_s30, 4096  ;;  %p888_p1 = scmp.lt.s32.totalorder %s1133_s13, %s886_s30 }
  0x3c   : > { %p883_p3 = pnand %p881_p2, %p869_p12  ;;  %p889_p7 = scmp.lt.s32.totalorder %s887_s6, %s880_s16 }
  0x3e   : > { %p884_p6 = pneg %p883_p3  ;;  %p890_p8 = por %p889_p7, %p888_p1 }
  0x40   : > { %p891_p10 = pnand %p890_p8, %p884_p6 }
  0x42   : > { %894 = shalt.err (!%p891_p10)
}
  0x43   : > { %757 = dma.hbm_to_vmem [thread:$0]  (!%p1097_p0), %s1131_s12, 2048, %s1133_s13, %s1135_s14, %s996_s10, %s996_s10, %s997_s11  }
  0x44   : > { %p1269_p12 = scmp.ne.s32.totalorder %s1266_s29, 0 }
  0x45   : > { %p1270_p11 = scmp.eq.s32.totalorder (!%p1269_p12), %s1053_s22, 0 }
  0x46   : > { %229 = sbr.rel (%p1269_p12) target bundleno = 901 (0x385), region = 36 }
  0x4b   : > { %960 = dma.done.wait (%p1270_p11), [#allocation4], 256   ;;  %p1271_p4 = pmov %p1270_p11 }
  0x4d   : > { %962 = vsyncadd (%p1271_p4), [#allocation4], 4294967040  ;;  %p1272_p8 = pmov %p1271_p4 }
  0x4e   : > { %p1273_p10 = pmov %p1271_p4 }
  0x4f   : > { %964 = dma.done.wait (%p1272_p8), [#allocation7], 256  }
  0x50   : > { %966 = vsyncadd (%p1273_p10), [#allocation7], 4294967040  ;;  %s239_s8 = sand.u32 1, %s1053_s22   ;;  %s241_s10 = sand.u32 1, %s985_s19  }
  0x51   : > { %s650_s11 = sshll.u32 %s241_s10, 7  ;;  %s240_s29 = scalar_lea.sflag [#allocation4], %s239_s8 }
  0x52   : > { %s1171_s9 = scalar_lea.vmem [#allocation8], %s650_s11  ;;  %p1274_p0 = scmp.ne.s32.totalorder %s1265_s28, 0 }
  0x54   : > { %968 = dma.done.wait (%p1274_p0), %s240_s29, 2048  }
  0x55   : > { %970 = vsyncadd (%p1274_p0), %s240_s29, 4294965248  ;;  %p268_p5 = scmp.lt.s32.totalorder %s1053_s22, 2  ;;  %p1275_p9 = scmp.ne.s32.totalorder %s1053_s22, 0 }
  0x57   : > { %s1179_s12 = scalar_select %p268_p5, %s1053_s22, 2 }
  0x58   : > { %274 = sbr.rel (%p1275_p9) target bundleno = 95 (0x5f), region = 52 }
  0x59   : > { %s270_s14 = scalar_lea.vmem %s1258_s3, %s1179_s12 }
  0x5d   : > { %v275_v0 = vld [vmem:[#allocation6] sm:$0xff]  ;;  %v276_v1 = vld [vmem:[#allocation6 + $0x8] sm:$0xff] }
  0x5e   : > { %277 = vst [vmem:[#allocation2] sm:$0xff] %v275_v0  ;;  %278 = vst [vmem:[#allocation2 + $0x8] sm:$0xff] %v276_v1 }
  0x5f PF: > { %v294_v2 = vld [vmem:[%s1171_s9 + $0x78] sm:$0xff]  ;;  %v293_v3 = vld [vmem:[%s1171_s9 + $0x70] sm:$0xff]  ;;  %v292_v4 = vld [vmem:[%s1171_s9 + $0x68] sm:$0xff]  ;;  %vm381_vm0 = vcmask 130048   ;;  %p655_p13 = scmp.ge.s32.totalorder %s1053_s22, 2 }
  0x60   : > { %687 = vmatprep.subr.mxu0 %v294_v2  ;;  %v291_v5 = vld [vmem:[%s1171_s9 + $0x60] sm:$0xff]  ;;  %v290_v7 = vld [vmem:[%s1171_s9 + $0x58] sm:$0xff]  ;;  %v289_v8 = vld [vmem:[%s1171_s9 + $0x50] sm:$0xff] }
  0x61   : > { %688 = vmatpush3.msra.mxu0 %v294_v2  ;;  %v288_v9 = vld [vmem:[%s1171_s9 + $0x48] sm:$0xff]  ;;  %v287_v10 = vld [vmem:[%s1171_s9 + $0x40] sm:$0xff]  ;;  %v286_v11 = vld [vmem:[%s1171_s9 + $0x38] sm:$0xff] }
  0x62   : > { %689 = vmatprep.subr.mxu0 %v293_v3  ;;  %v285_v12 = vld [vmem:[%s1171_s9 + $0x30] sm:$0xff]  ;;  %v284_v13 = vld [vmem:[%s1171_s9 + $0x28] sm:$0xff]  ;;  %v283_v14 = vld [vmem:[%s1171_s9 + $0x20] sm:$0xff] }
  0x63   : > { %690 = vmatpush3.msra.mxu0 %v293_v3  ;;  %v282_v15 = vld [vmem:[%s1171_s9 + $0x18] sm:$0xff]  ;;  %v281_v16 = vld [vmem:[%s1171_s9 + $0x10] sm:$0xff]  ;;  %v280_v17 = vld [vmem:[%s1171_s9 + $0x8] sm:$0xff] }
  0x64   : > { %691 = vmatprep.subr.mxu0 %v292_v4  ;;  %v279_v18 = vld [vmem:[%s1171_s9] sm:$0xff]  ;;  %v374_v23 = vld [vmem:[#allocation3 + $0x8] sm:$0xff]  ;;  %v652_v24 = vld [vmem:[%s270_s14] ss:$0 sm:$0xff] }
  0x65   : > { %v296_v6 = vld [vmem:[#allocation2] sm:$0xff]  ;;  %692 = vmatpush3.msra.mxu0 %v292_v4  ;;  %v297_v19 = vld [vmem:[#allocation2 + $0x8] sm:$0xff]  ;;  %v373_v20 = vld [vmem:[#allocation3] sm:$0xff] }
  0x66   : > { %719 = vmatprep.mubr.f32.mxu0 %v296_v6  ;;  %693 = vmatprep.subr.mxu0 %v291_v5 }
  0x67   : > { %694 = vmatpush3.msra.mxu0 %v291_v5  ;;  %726 = vmatprep.mubr.msk.f32.mxu1 %vm381_vm0, %v373_v20 }
  0x68   : > { %695 = vmatprep.subr.mxu0 %v290_v7 }
  0x69   : > { %696 = vmatpush3.msra.mxu0 %v290_v7 }
  0x6a   : > { %697 = vmatprep.subr.mxu0 %v289_v8 }
  0x6b   : > { %698 = vmatpush3.msra.mxu0 %v289_v8 }
  0x6c   : > { %699 = vmatprep.subr.mxu0 %v288_v9 }
  0x6d   : > { %700 = vmatpush3.msra.mxu0 %v288_v9 }
  0x6e   : > { %701 = vmatprep.subr.mxu0 %v287_v10 }
  0x6f   : > { %702 = vmatpush3.msra.mxu0 %v287_v10 }
  0x70   : > { %703 = vmatprep.subr.mxu0 %v286_v11 }
  0x71   : > { %704 = vmatpush3.msra.mxu0 %v286_v11 }
  0x72   : > { %705 = vmatprep.subr.mxu0 %v285_v12 }
  0x73   : > { %706 = vmatpush3.msra.mxu0 %v285_v12 }
  0x74   : > { %707 = vmatprep.subr.mxu0 %v284_v13 }
  0x75   : > { %708 = vmatpush3.msra.mxu0 %v284_v13 }
  0x76   : > { %709 = vmatprep.subr.mxu0 %v283_v14 }
  0x77   : > { %710 = vmatpush3.msra.mxu0 %v283_v14 }
  0x78   : > { %711 = vmatprep.subr.mxu0 %v282_v15 }
  0x79   : > { %712 = vmatpush3.msra.mxu0 %v282_v15 }
  0x7a   : > { %713 = vmatprep.subr.mxu0 %v281_v16 }
  0x7b   : > { %714 = vmatpush3.msra.mxu0 %v281_v16 }
  0x7c   : > { %715 = vmatprep.subr.mxu0 %v280_v17 }
  0x7d   : > { %716 = vmatpush3.msra.mxu0 %v280_v17 }
  0x7e   : > { %717 = vmatprep.subr.mxu0 %v279_v18 }
  0x7f   : > { %718 = vmatpush3.msra.mxu0 %v279_v18 }
  0x80   : > { %720 = vmatmul.mubr.f32.vlgmr.msra.gmra.mxu0 %v297_v19 }
 0x140   : > { %v721_v21 = vpop.f32.mrf.mxu0 }
 0x141   : > { %722 = vmatprep.subr.mxu1 %v721_v21 }
 0x142   : > { %v364_v22 = vpop.f32.mrf.mxu0  ;;  %723 = vmatpush3.msra.mxu1 %v721_v21 }
 0x143   : > { %724 = vmatprep.subr.mxu1 %v364_v22 }
 0x144   : > { %725 = vmatpush3.msra.mxu1 %v364_v22 }
 0x145   : > { %727 = vmatmul.mubr.msk.f32.vlgmr.msra.gmra.mxu1 %vm381_vm0, %v374_v23 }
 0x204   : > { %466 = sbr.rel (%p655_p13) target bundleno = 853 (0x355), region = 56 }
 0x205   : > { %v728_v25 = vpop.f32.mrf.mxu1 }
 0x206   : > { %v1208_v26 = vadd.f32 %v728_v25, %v652_v24 }
 0x207   : > { %v454_v27 = vpop.f32.mrf.mxu1 }
 0x208   : > { %v1210_v28 = vadd.f32 %v652_v24, %v454_v27 }
 0x209   : > { %v469_v29 = vlaneseq  ;;  %v468_v32 = vmax.f32 %v1208_v26, 0.0 }
 0x20a   : > { %v467_v30 = vmax.f32 %v1210_v28, 0.0 }
 0x20b   : > { %v470_v31 = vand.u32 127, %v469_v29 }
 0x20d   : > { %vm471_vm1 = vcmp.lt.s32.totalorder %v470_v31, 32 }
 0x20e   : > { %v472_v33 = vsel %vm471_vm1, %v467_v30, 0.0  ;;  %v473_v34 = vsel %vm471_vm1, %v468_v32, 0.0 }
 0x20f   : > { %474 = vadd.xlane.f32.xlu0 %v472_v33 }
 0x213   : > { %476 = vadd.xlane.f32.xlu0 %v473_v34 }
 0x298   : > { %v475_v35 = vpop.xlane.xlu0 %474 }
 0x299   : > { %v478_v36 = vmul.f32 0.03125, %v475_v35 }
 0x29b   : > { %v480_v37 = vsub.f32 %v467_v30, %v478_v36 }
 0x29c   : > { %v477_v38 = vpop.xlane.xlu0 %476 }
 0x29d   : > { %v479_v39 = vmul.f32 0.03125, %v477_v38  ;;  %v482_v40 = vsel %vm471_vm1, %v480_v37, 0.0 }
 0x29e   : > { %v484_v41 = vmul.f32 %v482_v40, %v482_v40 }
 0x29f   : > { %v481_v42 = vsub.f32 %v468_v32, %v479_v39 }
 0x2a0   : > { %486 = vadd.xlane.f32.xlu1 %v484_v41 }
 0x2a1   : > { %v483_v43 = vsel %vm471_vm1, %v481_v42, 0.0 }
 0x2a2   : > { %v485_v44 = vmul.f32 %v483_v43, %v483_v43 }
 0x2a4   : > { %488 = vadd.xlane.f32.xlu1 %v485_v44 }
 0x329   : > { %v487_v45 = vpop.xlane.xlu1 %486 }
 0x32a   : > { %v490_v46 = vmul.f32 0.032258064, %v487_v45 }
 0x32c   : > { %807 = vrsqrt.f32 %v490_v46  ;;  %vm494_vm2 = vcmp.eq.f32.partialorder %v490_v46, inf  ;;  %v497_v51 = vand.u32 2147483648, %v490_v46  ;;  %vm496_vm3 = vcmp.eq.f32.partialorder %v490_v46, 0.0 }
 0x32d   : > { %v489_v47 = vpop.xlane.xlu1 %488 }
 0x32e   : > { %v491_v48 = vmul.f32 0.032258064, %v489_v47 }
 0x330   : > { %809 = vrsqrt.f32 %v491_v48  ;;  %vm501_vm4 = vcmp.eq.f32.partialorder %v491_v48, inf  ;;  %v504_v57 = vand.u32 2147483648, %v491_v48  ;;  %vm503_vm5 = vcmp.eq.f32.partialorder %v491_v48, 0.0 }
 0x339   : > { %v808_v49 = vpop.eup %807 }
 0x33a   : > { %v493_v50 = vmul.f32 %v808_v49, %v490_v46 }
 0x33c   : > { %v495_v52 = vsel %vm494_vm2, %v490_v46, %v493_v50 }
 0x33d   : > { %v810_v53 = vpop.eup %809  ;;  %v498_v54 = vsel %vm496_vm3, %v497_v51, %v495_v52 }
 0x33e   : > { %v506_v55 = vadd.f32 1e-05, %v498_v54  ;;  %v500_v56 = vmul.f32 %v810_v53, %v491_v48 }
 0x340   : > { %811 = vrcp.f32 %v506_v55  ;;  %v502_v58 = vsel %vm501_vm4, %v491_v48, %v500_v56 }
 0x341   : > { %v505_v59 = vsel %vm503_vm5, %v504_v57, %v502_v58 }
 0x342   : > { %v507_v60 = vadd.f32 1e-05, %v505_v59 }
 0x344   : > { %813 = vrcp.f32 %v507_v60 }
 0x34d   : > { %v812_v61 = vpop.eup %811 }
 0x34e   : > { %v510_v62 = vmul.f32 %v812_v61, %v482_v40 }
 0x350   : > { %512 = vst [vmem:[#allocation2] sm:$0xff] %v510_v62 }
 0x351   : > { %v814_v63 = vpop.eup %813 }
 0x352   : > { %v511_v0 = vmul.f32 %v814_v63, %v483_v43 }
 0x354   : > { %513 = vst [vmem:[#allocation2 + $0x8] sm:$0xff] %v511_v0 }
 0x355 PF: > { %p656_p2 = scmp.ne.s32.totalorder %s1053_s22, 1 }
 0x357   : > { %517 = sbr.rel (%p656_p2) target bundleno = 862 (0x35e), region = 60 }
 0x35c   : > { %v518_v1 = vld [vmem:[#allocation2] sm:$0xff]  ;;  %v519_v2 = vld [vmem:[#allocation2 + $0x8] sm:$0xff] }
 0x35d   : > { %520 = vst [vmem:[#allocation10] sm:$0xff] %v518_v1  ;;  %521 = vst [vmem:[#allocation10 + $0x8] sm:$0xff] %v519_v2 }
 0x35e PF: > { %p657_p3 = scmp.ne.s32.totalorder %s1053_s22, 2 }
 0x360   : > { %525 = sbr.rel (%p657_p3) target bundleno = 870 (0x366), region = 64 }
 0x365   : > { %526 = vst [vmem:[#allocation9] sm:$0xff] %v1210_v28  ;;  %527 = vst [vmem:[#allocation9 + $0x8] sm:$0xff] %v1208_v26 }
 0x366 PF: > { %p763_p6 = scmp.eq.s32.totalorder %s1053_s22, 2  ;;  %s1000_s21 = smov [#allocation9]  }
 0x367   : > { %s534_s15 = sshll.u32 %s1000_s21, 4  ;;  %s535_s15 = int_to_ptr.vmem [resolvable:$true] %s534_s15 }
 0x368   : > { %s895_s18 = scalar_lea.vmem %s535_s15, 256  ;;  %p902_p11 = scmp.lt.s32.totalorder %s535_s15, %s535_s15 }
 0x369   : > { %p896_p1 = scmp.ne.s32.totalorder %s535_s15, %s895_s18  ;;  %p903_p4 = scmp.lt.s32.totalorder %s895_s18, %s895_s18 }
 0x36b   : > { %p897_p7 = pnand %p896_p1, %p763_p6  ;;  %p904_p8 = por %p903_p4, %p902_p11 }
 0x36d   : > { %p898_p12 = pneg %p897_p7 }
 0x36f   : > { %p905_p10 = pnand %p904_p8, %p898_p12 }
 0x371   : > { %908 = shalt.err (!%p905_p10)
}
 0x372   : > { %s1001_s24 = smov 128   ;;  %s1002_s25 = smov 8  }
 0x373   : > { %740 = dma.vmem_to_hbm [thread:$0]  (%p763_p6), %s535_s15, 256, %s1259_s4, [#allocation5], %s1001_s24, %s1001_s24, %s1002_s25  }
 0x374   : > { %s1003_s30 = smov [#allocation10]  }
 0x375   : > { %s547_s6 = sshll.u32 %s1003_s30, 4  ;;  %s548_s6 = int_to_ptr.vmem [resolvable:$true] %s547_s6 }
 0x376   : > { %s919_s8 = scalar_lea.vmem %s548_s6, 256  ;;  %p926_p13 = scmp.lt.s32.totalorder %s548_s6, %s548_s6 }
 0x377   : > { %p920_p0 = scmp.ne.s32.totalorder %s548_s6, %s919_s8  ;;  %p927_p2 = scmp.lt.s32.totalorder %s919_s8, %s919_s8 }
 0x379   : > { %p921_p5 = pnand %p920_p0, %p763_p6  ;;  %p928_p3 = por %p927_p2, %p926_p13 }
 0x37b   : > { %p922_p9 = pneg %p921_p5 }
 0x37d   : > { %p929_p1 = pnand %p928_p3, %p922_p9 }
 0x37f   : > { %932 = shalt.err (!%p929_p1)
}
 0x380   : > { %742 = dma.vmem_to_hbm [thread:$0]  (%p763_p6), %s548_s6, 256, %s1260_s5, [#allocation11], %s1001_s24, %s1001_s24, %s1002_s25  }
 0x381   : > { %972 = dma.done.wait (%p763_p6), [#allocation5], 256  }
 0x382   : > { %974 = vsyncadd (%p763_p6), [#allocation5], 4294967040 }
 0x383   : > { %976 = dma.done.wait (%p763_p6), [#allocation11], 256  }
 0x384   : > { %978 = vsyncadd (%p763_p6), [#allocation11], 4294967040 }
 0x385 PF: > { %p17_p7 = scmp.ge.s32.totalorder %s1056_s23, 5   ;;  %s1276_s18 = smov %s985_s19 }
 0x386   : > { %s1277_s19 = smov %s989_s20  ;;  %s1278_s20 = smov %s1066_s26 }
 0x387   : > { %s1279_s21 = smov %s1056_s23  ;;  %19 = sbr.rel (!%p17_p7) target bundleno = 5 (0x5), region = 107 }
 0x38c   :  { %567 = vsyncpa [#allocation4], 1 }
 0x38d   :  { %569 = vsyncpa [#allocation4 + $0x1], 1 }
 0x38e   :  { %570 = vsyncpa [#allocation7], 1 }
 0x38f   :  { %571 = vsyncpa [#allocation5], 1 }
 0x390   :  { %573 = vsyncpa [#allocation5 + $0x1], 1 }
 0x391   :  { %574 = vsyncpa [#allocation11], 1 }

</bundles_post_ra>
